<compile_context>
chip_gen: v7x
topology: tpu7x:2x2x1
jax: 0.10.0
libtpu: 0.0.40
codegen_flags: <defaults>
</compile_context>

<pallas_src>
import functools

import jax
import jax.numpy as jnp
from jax.experimental import pallas as pl
from jax.experimental.pallas import tpu as pltpu


def topdown_kernel(img_ref, q_ref,
                   w1v_ref, w1q_ref, b1_ref,
                   w2_ref,
                   wq_ref, bq_ref,
                   wv_ref, bv_ref,
                   out_ref):
    img = img_ref[...]                                  # (Bt, K, H) native dtype
    q = q_ref[...]                                      # (Bt, H)   native dtype
    Bt, K, H = img.shape

    # ---- Attention FC on concat([img, q_tiled]) (split weights), MXU f32 acc ----
    img2d = img.reshape(Bt * K, H)
    v_proj = jnp.dot(img2d, w1v_ref[...],
                     preferred_element_type=jnp.float32).reshape(Bt, K, H)
    q_proj = jnp.dot(q, w1q_ref[...],
                     preferred_element_type=jnp.float32)              # (Bt, H)
    joint = jnp.maximum(v_proj + q_proj[:, None, :] + b1_ref[...], 0.0)  # (Bt,K,H) f32

    # ---- logits = joint @ w2 on the MXU (w2 is an (H, 1) column) ----
    # b2 is omitted: softmax is shift-invariant, a shared constant cancels.
    logits = jnp.dot(joint.reshape(Bt * K, H), w2_ref[...],
                     preferred_element_type=jnp.float32).reshape(Bt, K)

    # ---- softmax over the K regions (dim=1 in torch), max-stabilized ----
    m = jnp.max(logits, axis=1, keepdims=True)
    e = jnp.exp(logits - m)
    att = e / jnp.sum(e, axis=1, keepdims=True)                        # (Bt, K) f32

    # ---- v_emb = (att * img).sum(1): K is small -> VPU mul + sublane reduce ----
    v_emb = jnp.sum(att[:, :, None] * img, axis=1)                     # (Bt, H) f32

    # ---- q_net / v_net (Linear + ReLU each) ----
    q_repr = jnp.maximum(
        jnp.dot(q, wq_ref[...], preferred_element_type=jnp.float32) + bq_ref[...],
        0.0)
    v_repr = jnp.maximum(
        jnp.dot(v_emb.astype(wv_ref.dtype), wv_ref[...],
                preferred_element_type=jnp.float32) + bv_ref[...],
        0.0)

    out_ref[...] = (q_repr * v_repr).astype(out_ref.dtype)


def topdown_forward(img, q, params, *, b_tile=8, vmem_limit_bytes=None):
    B, K, H = img.shape
    b_tile = min(b_tile, B)

    # Pad batch to a multiple of the tile (padded rows are discarded at the end).
    n_tiles = pl.cdiv(B, b_tile)
    Bp = n_tiles * b_tile
    if Bp != B:
        pad = Bp - B
        img = jnp.pad(img, ((0, pad), (0, 0), (0, 0)))
        q = jnp.pad(q, ((0, pad), (0, 0)))

    itemsize = jnp.dtype(img.dtype).itemsize
    weight_args = (params["w1v"], params["w1q"], params["b1"],
                   params["w2"],
                   params["wq"], params["bq"],
                   params["wv"], params["bv"])
    weight_bytes = sum(int(w.size) * jnp.dtype(w.dtype).itemsize for w in weight_args)
    cost = pl.CostEstimate(
        flops=2 * B * K * H * H + 6 * B * H * H + 4 * B * K * H,
        transcendentals=B * K,
        bytes_accessed=int(img.size) * itemsize + int(q.size) * itemsize
        + weight_bytes + B * H * itemsize,
    )

    # Batch-tiled specs for activations, constant-index (VMEM-resident) weights.
    img_spec = pl.BlockSpec((b_tile, K, H), lambda i: (i, 0, 0))
    q_spec = pl.BlockSpec((b_tile, H), lambda i: (i, 0))
    out_spec = pl.BlockSpec((b_tile, H), lambda i: (i, 0))

    def const2d(shape):
        return pl.BlockSpec(shape, lambda i: (0, 0))

    in_specs = [
        img_spec, q_spec,
        const2d(params["w1v"].shape), const2d(params["w1q"].shape),
        const2d(params["b1"].shape),
        const2d(params["w2"].shape),
        const2d(params["wq"].shape), const2d(params["bq"].shape),
        const2d(params["wv"].shape), const2d(params["bv"].shape),
    ]

    out = pl.pallas_call(
        topdown_kernel,
        out_shape=jax.ShapeDtypeStruct((Bp, H), img.dtype),
        grid=(n_tiles,),
        in_specs=in_specs,
        out_specs=out_spec,
        compiler_params=pltpu.CompilerParams(
            dimension_semantics=("parallel",),
            vmem_limit_bytes=vmem_limit_bytes,
        ),
        cost_estimate=cost,
    )(img, q, *weight_args)

    return out[:B] if Bp != B else out


def topdown_reference(img, q, params):
    """Pure-JAX reference (keeps the b2 bias; softmax shift-invariance makes it
    equivalent to the kernel's biasless logits)."""
    v_proj = jnp.einsum("bkh,hj->bkj", img, params["w1v"])
    q_proj = q @ params["w1q"]
    joint = jax.nn.relu(v_proj + q_proj[:, None, :] + params["b1"])
    logits = jnp.einsum("bkh,ho->bko", joint, params["w2"])[..., 0] + params["b2"][0, 0]
    att = jax.nn.softmax(logits, axis=1)
    v_emb = jnp.sum(att[:, :, None] * img, axis=1)
    q_repr = jax.nn.relu(q @ params["wq"] + params["bq"])
    v_repr = jax.nn.relu(v_emb @ params["wv"] + params["bv"])
    return q_repr * v_repr


def init_params(key, hidden, dtype=jnp.float32):
    ks = jax.random.split(key, 8)
    s = 0.1
    return {
        "w1v": (s * jax.random.normal(ks[0], (hidden, hidden))).astype(dtype),
        "w1q": (s * jax.random.normal(ks[1], (hidden, hidden))).astype(dtype),
        "b1":  (s * jax.random.normal(ks[2], (1, hidden))).astype(dtype),
        "w2":  (s * jax.random.normal(ks[3], (hidden, 1))).astype(dtype),
        "b2":  (s * jax.random.normal(ks[4], (1, 1))).astype(dtype),
        "wq":  (s * jax.random.normal(ks[5], (hidden, hidden))).astype(dtype),
        "bq":  (s * jax.random.normal(ks[6], (1, hidden))).astype(dtype),
        "wv":  (s * jax.random.normal(ks[7], (hidden, hidden))).astype(dtype),
        "bv":  jnp.ones((1, hidden), dtype),
    }


if __name__ == "__main__":
    # Small but lane-aligned shapes: H multiple of 128 (lane-dense stores),
    # B a multiple of the 8-row batch tile. (Module default mlp_hidden=512.)
    B, K, H = 16, 8, 128
    key = jax.random.PRNGKey(0)
    k_img, k_q, k_p = jax.random.split(key, 3)
    img = jax.random.normal(k_img, (B, K, H), jnp.float32)
    q = jax.random.normal(k_q, (B, H), jnp.float32)
    params = init_params(k_p, H)

    fwd = jax.jit(functools.partial(topdown_forward, b_tile=8))
    out = jax.block_until_ready(fwd(img, q, params))

    ref = topdown_reference(img, q, params)
    assert out.shape == (B, H)
    assert jnp.allclose(out, ref, atol=1e-4, rtol=1e-4), "mismatch vs reference"
    print("KERNEL_OK")
</pallas_src>

<mosaic_0001>
module attributes {stable_mosaic.version = 11 : i64} {
  func.func @topdown_kernel(%arg0: i32, %arg1: memref<8x8x128xf32, #tpu.memory_space<vmem>>, %arg2: memref<8x128xf32, #tpu.memory_space<vmem>>, %arg3: memref<128x128xf32, #tpu.memory_space<vmem>>, %arg4: memref<128x128xf32, #tpu.memory_space<vmem>>, %arg5: memref<1x128xf32, #tpu.memory_space<vmem>>, %arg6: memref<128x1xf32, #tpu.memory_space<vmem>>, %arg7: memref<128x128xf32, #tpu.memory_space<vmem>>, %arg8: memref<1x128xf32, #tpu.memory_space<vmem>>, %arg9: memref<128x128xf32, #tpu.memory_space<vmem>>, %arg10: memref<1x128xf32, #tpu.memory_space<vmem>>, %arg11: memref<8x128xf32, #tpu.memory_space<vmem>>) attributes {dimension_semantics = [#tpu.dimension_semantics<parallel>], iteration_bounds = array<i64: 2>, scalar_prefetch = 0 : i64, scratch_operands = 0 : i64, tpu.core_type = #tpu.core_type<tc>, window_params = [{transform_indices = @transform_0, window_bounds = array<i64: 8, 8, 128>}, {transform_indices = @transform_1, window_bounds = array<i64: 8, 128>}, {pipeline_mode = #tpu.pipeline_mode<synchronous>, transform_indices = @transform_2, window_bounds = array<i64: 128, 128>}, {pipeline_mode = #tpu.pipeline_mode<synchronous>, transform_indices = @transform_3, window_bounds = array<i64: 128, 128>}, {pipeline_mode = #tpu.pipeline_mode<synchronous>, transform_indices = @transform_4, window_bounds = array<i64: 1, 128>}, {pipeline_mode = #tpu.pipeline_mode<synchronous>, transform_indices = @transform_5, window_bounds = array<i64: 128, 1>}, {pipeline_mode = #tpu.pipeline_mode<synchronous>, transform_indices = @transform_6, window_bounds = array<i64: 128, 128>}, {pipeline_mode = #tpu.pipeline_mode<synchronous>, transform_indices = @transform_7, window_bounds = array<i64: 1, 128>}, {pipeline_mode = #tpu.pipeline_mode<synchronous>, transform_indices = @transform_8, window_bounds = array<i64: 128, 128>}, {pipeline_mode = #tpu.pipeline_mode<synchronous>, transform_indices = @transform_9, window_bounds = array<i64: 1, 128>}, {transform_indices = @transform_10, window_bounds = array<i64: 8, 128>}]} {
    %c0 = arith.constant 0 : index
    %c0_0 = arith.constant 0 : index
    %c0_1 = arith.constant 0 : index
    %0 = vector.load %arg1[%c0, %c0_0, %c0_1] : memref<8x8x128xf32, #tpu.memory_space<vmem>>, vector<8x8x128xf32>
    %c0_2 = arith.constant 0 : index
    %c0_3 = arith.constant 0 : index
    %1 = vector.load %arg2[%c0_2, %c0_3] : memref<8x128xf32, #tpu.memory_space<vmem>>, vector<8x128xf32>
    %2 = vector.shape_cast %0 : vector<8x8x128xf32> to vector<64x128xf32>
    %c0_4 = arith.constant 0 : index
    %c0_5 = arith.constant 0 : index
    %3 = vector.load %arg3[%c0_4, %c0_5] : memref<128x128xf32, #tpu.memory_space<vmem>>, vector<128x128xf32>
    %cst = arith.constant dense<0.000000e+00> : vector<64x128xf32>
    %4 = tpu.matmul %2, %3, %cst {dimension_numbers = #tpu.dot_dimension_numbers<[1], [0], [0], [1], [0, 0, 1, 1], [], []>} : vector<64x128xf32>, vector<128x128xf32>, vector<64x128xf32> -> vector<64x128xf32>
    %5 = vector.shape_cast %4 : vector<64x128xf32> to vector<8x8x128xf32>
    %c0_6 = arith.constant 0 : index
    %c0_7 = arith.constant 0 : index
    %6 = vector.load %arg4[%c0_6, %c0_7] : memref<128x128xf32, #tpu.memory_space<vmem>>, vector<128x128xf32>
    %cst_8 = arith.constant dense<0.000000e+00> : vector<8x128xf32>
    %7 = tpu.matmul %1, %6, %cst_8 {dimension_numbers = #tpu.dot_dimension_numbers<[1], [0], [0], [1], [0, 0, 1, 1], [], []>} : vector<8x128xf32>, vector<128x128xf32>, vector<8x128xf32> -> vector<8x128xf32>
    %8 = vector.shape_cast %7 : vector<8x128xf32> to vector<8x1x128xf32>
    %9 = vector.broadcast %8 : vector<8x1x128xf32> to vector<8x8x128xf32>
    %10 = arith.addf %5, %9 : vector<8x8x128xf32>
    %c0_9 = arith.constant 0 : index
    %c0_10 = arith.constant 0 : index
    %11 = vector.load %arg5[%c0_9, %c0_10] : memref<1x128xf32, #tpu.memory_space<vmem>>, vector<1x128xf32>
    %12 = vector.shape_cast %11 : vector<1x128xf32> to vector<1x1x128xf32>
    %13 = vector.broadcast %12 : vector<1x1x128xf32> to vector<8x8x128xf32>
    %14 = arith.addf %10, %13 : vector<8x8x128xf32>
    %cst_11 = arith.constant 0.000000e+00 : f32
    %15 = vector.broadcast %cst_11 : f32 to vector<8x8x128xf32>
    %16 = arith.maximumf %14, %15 : vector<8x8x128xf32>
    %17 = vector.shape_cast %16 : vector<8x8x128xf32> to vector<64x128xf32>
    %c0_12 = arith.constant 0 : index
    %c0_13 = arith.constant 0 : index
    %18 = vector.load %arg6[%c0_12, %c0_13] : memref<128x1xf32, #tpu.memory_space<vmem>>, vector<128x1xf32>
    %cst_14 = arith.constant dense<0.000000e+00> : vector<64x1xf32>
    %19 = tpu.matmul %17, %18, %cst_14 {dimension_numbers = #tpu.dot_dimension_numbers<[1], [0], [0], [1], [0, 0, 1, 1], [], []>} : vector<64x128xf32>, vector<128x1xf32>, vector<64x1xf32> -> vector<64x1xf32>
    %20 = vector.shape_cast %19 : vector<64x1xf32> to vector<8x8xf32>
    %cst_15 = arith.constant dense<0xFF800000> : vector<8xf32>
    %21 = vector.multi_reduction <maximumf>, %20, %cst_15 [1] : vector<8x8xf32> to vector<8xf32>
    %22 = vector.shape_cast %21 : vector<8xf32> to vector<8x1xf32>
    %23 = vector.broadcast %22 : vector<8x1xf32> to vector<8x8xf32>
    %24 = arith.subf %20, %23 : vector<8x8xf32>
    %25 = math.exp %24 : vector<8x8xf32>
    %cst_16 = arith.constant dense<0.000000e+00> : vector<8xf32>
    %26 = vector.multi_reduction <add>, %25, %cst_16 [1] : vector<8x8xf32> to vector<8xf32>
    %27 = vector.shape_cast %26 : vector<8xf32> to vector<8x1xf32>
    %28 = vector.broadcast %27 : vector<8x1xf32> to vector<8x8xf32>
    %29 = arith.divf %25, %28 : vector<8x8xf32>
    %30 = vector.shape_cast %29 : vector<8x8xf32> to vector<8x8x1xf32>
    %31 = vector.broadcast %30 : vector<8x8x1xf32> to vector<8x8x128xf32>
    %32 = arith.mulf %31, %0 : vector<8x8x128xf32>
    %cst_17 = arith.constant dense<0.000000e+00> : vector<8x128xf32>
    %33 = vector.multi_reduction <add>, %32, %cst_17 [1] : vector<8x8x128xf32> to vector<8x128xf32>
    %c0_18 = arith.constant 0 : index
    %c0_19 = arith.constant 0 : index
    %34 = vector.load %arg7[%c0_18, %c0_19] : memref<128x128xf32, #tpu.memory_space<vmem>>, vector<128x128xf32>
    %cst_20 = arith.constant dense<0.000000e+00> : vector<8x128xf32>
    %35 = tpu.matmul %1, %34, %cst_20 {dimension_numbers = #tpu.dot_dimension_numbers<[1], [0], [0], [1], [0, 0, 1, 1], [], []>} : vector<8x128xf32>, vector<128x128xf32>, vector<8x128xf32> -> vector<8x128xf32>
    %c0_21 = arith.constant 0 : index
    %c0_22 = arith.constant 0 : index
    %36 = vector.load %arg8[%c0_21, %c0_22] : memref<1x128xf32, #tpu.memory_space<vmem>>, vector<1x128xf32>
    %37 = vector.broadcast %36 : vector<1x128xf32> to vector<8x128xf32>
    %38 = arith.addf %35, %37 : vector<8x128xf32>
    %cst_23 = arith.constant 0.000000e+00 : f32
    %39 = vector.broadcast %cst_23 : f32 to vector<8x128xf32>
    %40 = arith.maximumf %38, %39 : vector<8x128xf32>
    %c0_24 = arith.constant 0 : index
    %c0_25 = arith.constant 0 : index
    %41 = vector.load %arg9[%c0_24, %c0_25] : memref<128x128xf32, #tpu.memory_space<vmem>>, vector<128x128xf32>
    %cst_26 = arith.constant dense<0.000000e+00> : vector<8x128xf32>
    %42 = tpu.matmul %33, %41, %cst_26 {dimension_numbers = #tpu.dot_dimension_numbers<[1], [0], [0], [1], [0, 0, 1, 1], [], []>} : vector<8x128xf32>, vector<128x128xf32>, vector<8x128xf32> -> vector<8x128xf32>
    %c0_27 = arith.constant 0 : index
    %c0_28 = arith.constant 0 : index
    %43 = vector.load %arg10[%c0_27, %c0_28] : memref<1x128xf32, #tpu.memory_space<vmem>>, vector<1x128xf32>
    %44 = vector.broadcast %43 : vector<1x128xf32> to vector<8x128xf32>
    %45 = arith.addf %42, %44 : vector<8x128xf32>
    %cst_29 = arith.constant 0.000000e+00 : f32
    %46 = vector.broadcast %cst_29 : f32 to vector<8x128xf32>
    %47 = arith.maximumf %45, %46 : vector<8x128xf32>
    %48 = arith.mulf %40, %47 : vector<8x128xf32>
    %c0_30 = arith.constant 0 : index
    %c0_31 = arith.constant 0 : index
    %49 = vector.load %arg11[%c0_30, %c0_31] : memref<8x128xf32, #tpu.memory_space<vmem>>, vector<8x128xf32>
    tpu.vector_store %arg11[%c0_30, %c0_31], %48 {strides = array<i32>} : memref<8x128xf32, #tpu.memory_space<vmem>>, vector<8x128xf32>,
    return
  }
  func.func @transform_0(%arg0: i32) -> (i32, i32, i32) {
    %c0_i32 = arith.constant 0 : i32
    %c0_i32_0 = arith.constant 0 : i32
    %c0_i32_1 = arith.constant 0 : i32
    return %arg0, %c0_i32, %c0_i32_0 : i32, i32, i32
  }
  func.func @transform_1(%arg0: i32) -> (i32, i32) {
    %c0_i32 = arith.constant 0 : i32
    %c0_i32_0 = arith.constant 0 : i32
    return %arg0, %c0_i32 : i32, i32
  }
  func.func @transform_2(%arg0: i32) -> (i32, i32) {
    %c0_i32 = arith.constant 0 : i32
    %c0_i32_0 = arith.constant 0 : i32
    %c0_i32_1 = arith.constant 0 : i32
    return %c0_i32, %c0_i32_0 : i32, i32
  }
  func.func @transform_3(%arg0: i32) -> (i32, i32) {
    %c0_i32 = arith.constant 0 : i32
    %c0_i32_0 = arith.constant 0 : i32
    %c0_i32_1 = arith.constant 0 : i32
    return %c0_i32, %c0_i32_0 : i32, i32
  }
  func.func @transform_4(%arg0: i32) -> (i32, i32) {
    %c0_i32 = arith.constant 0 : i32
    %c0_i32_0 = arith.constant 0 : i32
    %c0_i32_1 = arith.constant 0 : i32
    return %c0_i32, %c0_i32_0 : i32, i32
  }
  func.func @transform_5(%arg0: i32) -> (i32, i32) {
    %c0_i32 = arith.constant 0 : i32
    %c0_i32_0 = arith.constant 0 : i32
    %c0_i32_1 = arith.constant 0 : i32
    return %c0_i32, %c0_i32_0 : i32, i32
  }
  func.func @transform_6(%arg0: i32) -> (i32, i32) {
    %c0_i32 = arith.constant 0 : i32
    %c0_i32_0 = arith.constant 0 : i32
    %c0_i32_1 = arith.constant 0 : i32
    return %c0_i32, %c0_i32_0 : i32, i32
  }
  func.func @transform_7(%arg0: i32) -> (i32, i32) {
    %c0_i32 = arith.constant 0 : i32
    %c0_i32_0 = arith.constant 0 : i32
    %c0_i32_1 = arith.constant 0 : i32
    return %c0_i32, %c0_i32_0 : i32, i32
  }
  func.func @transform_8(%arg0: i32) -> (i32, i32) {
    %c0_i32 = arith.constant 0 : i32
    %c0_i32_0 = arith.constant 0 : i32
    %c0_i32_1 = arith.constant 0 : i32
    return %c0_i32, %c0_i32_0 : i32, i32
  }
  func.func @transform_9(%arg0: i32) -> (i32, i32) {
    %c0_i32 = arith.constant 0 : i32
    %c0_i32_0 = arith.constant 0 : i32
    %c0_i32_1 = arith.constant 0 : i32
    return %c0_i32, %c0_i32_0 : i32, i32
  }
  func.func @transform_10(%arg0: i32) -> (i32, i32) {
    %c0_i32 = arith.constant 0 : i32
    %c0_i32_0 = arith.constant 0 : i32
    return %arg0, %c0_i32 : i32, i32
  }
}

</mosaic_0001>

<bundles_post_ra>
// kernel: topdown_forward.1
= control target key start
LH: loop header
LB: loop body
LE: loop exit
PB: predicated region body
PF: predicated region fallthrough
CT: control target
= control target key end

     0   :  { %s3085_s0 = inlined_call_operand.vmem [shape: f32[16,8,128], index: 0, kind: input, shape index: {}]   ;;  %s3086_s1 = inlined_call_operand.hbm [shape: f32[16,128], index: 1, kind: input, shape index: {}]   ;;  %s3087_s2 = inlined_call_operand.hbm [shape: f32[128,128], index: 2, kind: input, shape index: {}]   ;;  %s3088_s3 = inlined_call_operand.hbm [shape: f32[128,128], index: 3, kind: input, shape index: {}]   ;;  %s3089_s4 = inlined_call_operand.vmem [shape: f32[1,128], index: 4, kind: input, shape index: {}]   ;;  %s3090_s5 = inlined_call_operand.vmem [shape: f32[128,1], index: 5, kind: input, shape index: {}]   ;;  %s3091_s6 = inlined_call_operand.hbm [shape: f32[128,128], index: 6, kind: input, shape index: {}]   ;;  %s3092_s7 = inlined_call_operand.vmem [shape: f32[1,128], index: 7, kind: input, shape index: {}]   ;;  %s3093_s8 = inlined_call_operand.hbm [shape: f32[128,128], index: 8, kind: input, shape index: {}]   ;;  %s3094_s9 = inlined_call_operand.vmem [shape: f32[1,128], index: 9, kind: input, shape index: {}]   ;;  %s3095_s10 = inlined_call_operand.hbm [shape: f32[16,128], index: 10, kind: output, shape index: {}]  }
   0x1   :  { %3100 = sst [smem:[#allocation16_spill]] %s3087_s2 }
   0x2   :  { %3101 = sst [smem:[#allocation17_spill]] %s3094_s9 }
   0x3   :  { %3102 = sst [smem:[#allocation18_spill]] %s3095_s10 }
   0x4   :  { %15 = vsyncpa [#allocation3], 0 }
   0x5   :  { %17 = vsyncpa [#allocation3 + $0x1], 0 }
   0x6   :  { %18 = vsyncpa [#allocation6], 0 }
   0x7   :  { %19 = vsyncpa [#allocation9], 0 }
   0x8   :  { %20 = vsyncpa [#allocation4], 0 }
   0x9   :  { %22 = vsyncpa [#allocation4 + $0x1], 0  ;;  %s2498_s13 = smov 0   ;;  %s2500_s14 = smov 0  }
   0xa   :  { %s2502_s15 = smov 0   ;;  %s2504_s16 = smov 0  }
   0xb LB: > { %s2430_s17 = smov [#allocation5]   ;;  %s2519_s19 = sadd.s32 4294967295, %s2428_s16   ;;  %s2428_s16 = sphi %s2504_s16, %s3126_s16   ;;  %s2424_s15 = sphi %s2502_s15, %s3125_s15   ;;  %s2420_s14 = sphi %s2500_s14, %s3124_s14   ;;  %s2416_s13 = sphi %s2498_s13, %s3123_s13  }
   0xc   : > { %s291_s18 = sshll.u32 %s2430_s17, 4  ;;  %p1632_p0 = scmp.ge.s32.totalorder %s2428_s16, 1  ;;  %s2524_s18 = int_to_ptr.vmem [resolvable:$true] %s291_s18 }
   0xd   : > { %p3097_p1 = scmp.eq.s32.totalorder %s2519_s19, 0  ;;  %p279_p2 = scmp.lt.s32.totalorder %s2428_s16, 3 }
   0xe   : > { %s2431_s21 = smov [#allocation8]   ;;  %s2432_s24 = smov [#allocation7]  }
   0xf   : > { %p2526_p3 = pnand %p1632_p0, %p279_p2  ;;  %s323_s22 = sshll.u32 %s2431_s21, 4  ;;  %s2539_s22 = int_to_ptr.vmem [resolvable:$true] %s323_s22 }
  0x10   : > { %s304_s25 = sshll.u32 %s2432_s24, 4  ;;  %s3105_s2 = sld [smem:[#allocation16_spill]]  ;;  %s2541_s25 = int_to_ptr.vmem [resolvable:$true] %s304_s25 }
  0x11   : > { %s3103_s20 = scalar_select %p2526_p3, 1, 0 }
  0x12   : > { %p2104_p5 = pneg %p2526_p3 }
  0x14   : > { %p2535_p6 = pnand %p2104_p5, %p3097_p1 }
  0x16   : > { %s2212_s28 = scalar_lea.hbm %s3105_s2, 2048  ;;  %p2551_p8 = pneg %p2535_p6 }
  0x17   : > { %p2213_p7 = scmp.ne.s32.totalorder %s3105_s2, %s2212_s28  ;;  %p2219_p11 = scmp.lt.u32.totalorder %s2212_s28, %s3105_s2 }
  0x19   : > { %p2215_p9 = pnand %p2551_p8, %p2213_p7 }
  0x1b   : > { %p2216_p10 = pneg %p2215_p9 }
  0x1d   : > { %p2221_p12 = pnand %p2219_p11, %p2216_p10 }
  0x1f   : > { %2224 = shalt.err (!%p2221_p12)
}
  0x20   : > { %s2225_s21 = scalar_lea.vmem %s2524_s18, 2048  ;;  %p2233_p5 = scmp.lt.s32.totalorder %s2524_s18, %s2524_s18 }
  0x21   : > { %p2226_p13 = scmp.ne.s32.totalorder %s2524_s18, %s2225_s21  ;;  %p2234_p4 = scmp.lt.s32.totalorder %s2225_s21, %s2225_s21 }
  0x23   : > { %p2228_p0 = pnand %p2226_p13, %p2551_p8  ;;  %p2235_p7 = por %p2234_p4, %p2233_p5 }
  0x25   : > { %p2229_p2 = pneg %p2228_p0 }
  0x27   : > { %p2236_p9 = pnand %p2235_p7, %p2229_p2 }
  0x29   : > { %2239 = shalt.err (!%p2236_p9)
}
  0x2a   : > { %s2433_s24 = smov 128   ;;  %s2434_s26 = smov 8  }
  0x2b   : > { %2107 = dma.hbm_to_vmem [thread:$0]  (!%p2535_p6), %s3105_s2, 2048, %s2524_s18, [#allocation6], %s2433_s24, %s2433_s24, %s2434_s26  }
  0x2c   : > { %s2240_s12 = scalar_lea.hbm %s3091_s6, 2048 }
  0x2d   : > { %p2241_p4 = scmp.ne.s32.totalorder %s3091_s6, %s2240_s12  ;;  %p2247_p12 = scmp.lt.u32.totalorder %s2240_s12, %s3091_s6 }
  0x2f   : > { %p2243_p10 = pnand %p2241_p4, %p2551_p8 }
  0x31   : > { %p2244_p11 = pneg %p2243_p10 }
  0x33   : > { %p2249_p13 = pnand %p2247_p12, %p2244_p11 }
  0x35   : > { %2252 = shalt.err (!%p2249_p13)
}
  0x36   : > { %s2253_s18 = scalar_lea.vmem %s2539_s22, 2048  ;;  %p2261_p7 = scmp.lt.s32.totalorder %s2539_s22, %s2539_s22 }
  0x37   : > { %p2254_p0 = scmp.ne.s32.totalorder %s2539_s22, %s2253_s18  ;;  %p2262_p9 = scmp.lt.s32.totalorder %s2253_s18, %s2253_s18 }
  0x39   : > { %p2256_p2 = pnand %p2254_p0, %p2551_p8  ;;  %p2263_p4 = por %p2262_p9, %p2261_p7 }
  0x3b   : > { %p2257_p5 = pneg %p2256_p2 }
  0x3d   : > { %p2264_p10 = pnand %p2263_p4, %p2257_p5 }
  0x3f   : > { %2267 = shalt.err (!%p2264_p10)
}
  0x40   : > { %2113 = dma.hbm_to_vmem [thread:$0]  (!%p2535_p6), %s3091_s6, 2048, %s2539_s22, [#allocation9], %s2433_s24, %s2433_s24, %s2434_s26  }
  0x41   : > { %s2268_s29 = scalar_lea.hbm %s3088_s3, 2048 }
  0x42   : > { %p2269_p11 = scmp.ne.s32.totalorder %s3088_s3, %s2268_s29  ;;  %p2275_p0 = scmp.lt.u32.totalorder %s2268_s29, %s3088_s3 }
  0x44   : > { %p2271_p12 = pnand %p2269_p11, %p2551_p8 }
  0x46   : > { %p2272_p13 = pneg %p2271_p12 }
  0x48   : > { %p2277_p2 = pnand %p2275_p0, %p2272_p13 }
  0x4a   : > { %2280 = shalt.err (!%p2277_p2)
}
  0x4b   : > { %s2281_s22 = scalar_lea.vmem %s2541_s25, 2048  ;;  %p2289_p4 = scmp.lt.s32.totalorder %s2541_s25, %s2541_s25 }
  0x4c   : > { %p2282_p5 = scmp.ne.s32.totalorder %s2541_s25, %s2281_s22  ;;  %p2290_p10 = scmp.lt.s32.totalorder %s2281_s22, %s2281_s22 }
  0x4e   : > { %p2284_p7 = pnand %p2282_p5, %p2551_p8  ;;  %p2291_p11 = por %p2290_p10, %p2289_p4 }
  0x50   : > { %p2285_p9 = pneg %p2284_p7 }
  0x52   : > { %p2292_p12 = pnand %p2291_p11, %p2285_p9 }
  0x54   : > { %2295 = shalt.err (!%p2292_p12)
}
  0x55   : > { %2110 = dma.hbm_to_vmem [thread:$0]  (!%p2535_p6), %s3088_s3, 2048, %s2541_s25, [#allocation6], %s2433_s24, %s2433_s24, %s2434_s26  }
  0x56   : > { %s2435_s10 = smov [#allocation10]   ;;  %s2296_s30 = scalar_lea.hbm %s3093_s8, 2048 }
  0x57   : > { %s339_s27 = sshll.u32 %s2435_s10, 4  ;;  %p2297_p13 = scmp.ne.s32.totalorder %s3093_s8, %s2296_s30  ;;  %s340_s27 = int_to_ptr.vmem [resolvable:$true] %s339_s27 }
  0x58   : > { %p2303_p5 = scmp.lt.u32.totalorder %s2296_s30, %s3093_s8 }
  0x59   : > { %p2299_p0 = pnand %p2297_p13, %p2551_p8 }
  0x5b   : > { %p2300_p2 = pneg %p2299_p0 }
  0x5d   : > { %p2305_p7 = pnand %p2303_p5, %p2300_p2 }
  0x5f   : > { %2308 = shalt.err (!%p2305_p7)
}
  0x60   : > { %s2309_s25 = scalar_lea.vmem %s340_s27, 2048  ;;  %p2317_p11 = scmp.lt.s32.totalorder %s340_s27, %s340_s27 }
  0x61   : > { %p2310_p9 = scmp.ne.s32.totalorder %s340_s27, %s2309_s25  ;;  %p2318_p12 = scmp.lt.s32.totalorder %s2309_s25, %s2309_s25 }
  0x63   : > { %p2312_p4 = pnand %p2310_p9, %p2551_p8  ;;  %p2319_p1 = por %p2318_p12, %p2317_p11 }
  0x65   : > { %p2313_p10 = pneg %p2312_p4 }
  0x67   : > { %p2320_p3 = pnand %p2319_p1, %p2313_p10 }
  0x69   : > { %2323 = shalt.err (!%p2320_p3)
}
  0x6a   : > { %2116 = dma.hbm_to_vmem [thread:$0]  (!%p2535_p6), %s3093_s8, 2048, %s340_s27, [#allocation9], %s2433_s24, %s2433_s24, %s2434_s26  }
  0x6b   : > { %s1631_s23 = sadd.s32 4294967294, %s2428_s16   ;;  %s2650_s11 = sadd.s32 1, %s2428_s16  }
  0x6c   : > { %s58_s10 = ssub.s32 %s2428_s16, %s2650_s11  ;;  %s61_s28 = sadd.s32 1, %s2424_s15 }
  0x6d   : > { %p59_p1 = scmp.eq.s32.totalorder %s58_s10, 0  ;;  %p68_p3 = scmp.ne.s32.totalorder %s2424_s15, %s2420_s14 }
  0x6e   : > { %p69_p8 = scmp.eq.s32.totalorder %s2428_s16, 0  ;;  %p74_p13 = scmp.ne.s32.totalorder %s2420_s14, %s2416_s13 }
  0x6f   : > { %s2661_s29 = scalar_select %p59_p1, %s2424_s15, %s61_s28  }
  0x70   : > { %p2663_p0 = por %p69_p8, %p68_p3  ;;  %p3108_p2 = scmp.eq.s32.totalorder %s2519_s19, 0 }
  0x71   : > { %p266_p5 = scmp.eq.s32.totalorder %s2519_s19, 1  ;;  %p272_p7 = scmp.eq.s32.totalorder %s1631_s23, 1 }
  0x72   : > { %p2669_p6 = por %p3108_p2, %p74_p13  ;;  %p2129_p9 = scmp.lt.s32.totalorder %s2428_s16, 2 }
  0x73   : > { %s365_s26 = sand.u32 1, %s2424_s15   ;;  %p2676_p4 = por %p266_p5, %p68_p3 }
  0x74   : > { %p2680_p10 = por %p272_p7, %p74_p13  ;;  %s1638_s17 = sshll.u32 %s365_s26, 3 }
  0x75   : > { %s3110_s27 = scalar_select %p2676_p4, 1, 0 }
  0x76   : > { %s3111_s12 = scalar_select %p2680_p10, 1, 0 }
  0x77   : > { %s1639_s21 = sshll.u32 %s2428_s16, 7  ;;  %s369_s9 = scalar_lea.vmem [#allocation2], %s1638_s17 }
  0x78   : > { %s2688_s18 = scalar_lea.hbm %s3086_s1, %s1639_s21  ;;  %s376_s23 = sshll.u32 %s369_s9, 4  ;;  %s2690_s23 = int_to_ptr.vmem [resolvable:$true] %s376_s23 }
  0x79   : > { %p2694_p11 = pnand %p2129_p9, %p2663_p0  ;;  %s366_s28 = scalar_lea.sflag [#allocation3], %s365_s26 }
  0x7a   : > { %s2324_s2 = scalar_lea.hbm %s2688_s18, 128  ;;  %s2329_s22 = scalar_lea.hbm %s3086_s1, 256 }
  0x7b   : > { %p2325_p12 = scmp.ne.s32.totalorder %s2688_s18, %s2324_s2  ;;  %p2326_p1 = pneg %p2694_p11 }
  0x7c   : > { %p2330_p13 = scmp.lt.u32.totalorder %s2688_s18, %s3086_s1  ;;  %p2331_p0 = scmp.lt.u32.totalorder %s2329_s22, %s2324_s2 }
  0x7d   : > { %p2327_p3 = pnand %p2326_p1, %p2325_p12  ;;  %p2333_p5 = scmp.lt.u32.totalorder %s2324_s2, %s2688_s18 }
  0x7e   : > { %p2332_p2 = por %p2331_p0, %p2330_p13 }
  0x7f   : > { %p2328_p8 = pneg %p2327_p3 }
  0x80   : > { %p2334_p7 = por %p2333_p5, %p2332_p2 }
  0x82   : > { %p2335_p9 = pnand %p2334_p7, %p2328_p8 }
  0x84   : > { %2338 = shalt.err (!%p2335_p9)
}
  0x85   : > { %s2339_s26 = scalar_lea.vmem %s2690_s23, 128  ;;  %s2436_s9 = smov [#allocation2]  }
  0x86   : > { %p2340_p12 = scmp.ne.s32.totalorder %s2690_s23, %s2339_s26  ;;  %s2344_s17 = sshll.u32 %s2436_s9, 4  ;;  %s2345_s17 = int_to_ptr.vmem [resolvable:$false] %s2344_s17 }
  0x87   : > { %s2346_s21 = scalar_lea.vmem %s2345_s17, 256  ;;  %p2347_p4 = scmp.lt.s32.totalorder %s2690_s23, %s2345_s17 }
  0x88   : > { %p2342_p3 = pnand %p2340_p12, %p2326_p1  ;;  %p2348_p13 = scmp.lt.s32.totalorder %s2346_s21, %s2339_s26 }
  0x8a   : > { %p2343_p10 = pneg %p2342_p3  ;;  %p2349_p0 = por %p2348_p13, %p2347_p4 }
  0x8c   : > { %p2350_p2 = pnand %p2349_p0, %p2343_p10 }
  0x8e   : > { %2353 = shalt.err (!%p2350_p2)
}
  0x8f   : > { %2120 = dma.hbm_to_vmem [thread:$0]  (!%p2694_p11), %s2688_s18, 128, %s2690_s23, %s366_s28  }
  0x90   : > { %p3113_p8 = scmp.ne.s32.totalorder %s3103_s20, 0 }
  0x91   : > { %s2726_s2 = sand.u32 (!%p3113_p8), 1, %s2420_s14  }
  0x92   : > { %385 = sbr.rel (%p3113_p8) target bundleno = 1657 (0x679), region = 60  ;;  %s1641_s22 = sshll.u32 (!%p3113_p8), %s2726_s2, 3 }
  0x93   : > { %s388_s30 = scalar_lea.sflag (!%p3113_p8), [#allocation3], %s2726_s2  ;;  %s2732_s25 = scalar_lea.vmem (!%p3113_p8), [#allocation2], %s1641_s22 }
  0x99   : > { %2399 = dma.done.wait (%p2669_p6), %s388_s30, 128  }
  0x9a   : > { %2401 = vsyncadd (%p2669_p6), %s388_s30, 4294967168  ;;  %p3114_p4 = scmp.eq.s32.totalorder %s2519_s19, 0 }
  0x9c   : > { %2403 = dma.done.wait (%p3114_p4), [#allocation6], 4096   ;;  %p3115_p10 = pmov %p3114_p4 }
  0x9d   : > { %p3116_p11 = pmov %p3114_p4 }
  0x9e   : > { %2405 = vsyncadd (%p3115_p10), [#allocation6], 4294963200 }
  0x9f   : > { %2407 = dma.done.wait (%p3116_p11), [#allocation9], 4096   ;;  %p3117_p1 = pmov %p3114_p4 }
  0xa0   : > { %s1647_s20 = sshll.u32 %s2519_s19, 3  ;;  %v2437_v0 = vmov 0.0|0.0   ;;  %vm2438_vm0 = vmmov 0   ;;  %v2439_v1 = vmov 0.0   ;;  %v464_v2 = vld [vmem:[#allocation5] sm:$0xff]  ;;  %v465_v3 = vld [vmem:[#allocation5 + $0x8] sm:$0xff] }
  0xa1   : > { %2409 = vsyncadd (%p3117_p1), [#allocation9], 4294963200  ;;  %1980 = vmatprep.subr.bf16.mxu1 %v2437_v0  ;;  %1831 = vmatprep.mubr.msk.f32.mxu1 %vm2438_vm0, %v2439_v1  ;;  %p450_p6 = scmp.lt.s32.totalorder %s1647_s20, 15  ;;  %v585_v4 = vld [vmem:[#allocation7] sm:$0xff]  ;;  %v1948_v5 = vpack.c.bf16 %v465_v3, %v464_v2  ;;  %v586_v6 = vld [vmem:[#allocation7 + $0x8] sm:$0xff]  ;;  %vm979_vm1 = vcmask 1041409  }
  0xa2   : > { %v466_v7 = vld [vmem:[#allocation5 + $0x10] sm:$0xff]  ;;  %v467_v8 = vld [vmem:[#allocation5 + $0x18] sm:$0xff]  ;;  %v1981_v9 = vpack.c.bf16 %v586_v6, %v585_v4  ;;  %v468_v13 = vld [vmem:[#allocation5 + $0x20] sm:$0xff]  ;;  %vm981_vm2 = vcmask 1042434   ;;  %vm983_vm3 = vcmask 1043459   ;;  %vm985_vm4 = vcmask 1044484  }
  0xa3   : > { %s3128_s20 = smov (!%p450_p6, %s1647_s20), 15  ;;  %v1952_v10 = vpack.c.bf16 %v467_v8, %v466_v7  ;;  %v587_v11 = vld [vmem:[#allocation7 + $0x10] sm:$0xff]  ;;  %v588_v12 = vld [vmem:[#allocation7 + $0x18] sm:$0xff]  ;;  %1949 = vmatprep.subr.bf16.mxu0 %v1948_v5  ;;  %v469_v14 = vld [vmem:[#allocation5 + $0x28] sm:$0xff]  ;;  %vm987_vm5 = vcmask 1045509   ;;  %vm989_vm6 = vcmask 1046534  }
  0xa4   : > { %1982 = vmatpush3.bf16.msra.mxu1 %v1981_v9  ;;  %1951 = vmatpush3.bf16.msra.mxu0 %v1948_v5  ;;  %v1984_v15 = vpack.c.bf16 %v588_v12, %v587_v11  ;;  %s1648_s24 = sshll.u32 %s3128_s20, 3  ;;  %v1956_v16 = vpack.c.bf16 %v469_v14, %v468_v13  ;;  %v589_v17 = vld [vmem:[#allocation7 + $0x20] sm:$0xff]  ;;  %v590_v18 = vld [vmem:[#allocation7 + $0x28] sm:$0xff]  ;;  %v470_v19 = vld [vmem:[#allocation5 + $0x30] sm:$0xff]  ;;  %vm991_vm7 = vcmask 1047559   ;;  %vm994_vm8 = vcmask 64512  }
  0xa5   : > { %1983 = vmatprep.subr.bf16.mxu1 %v2437_v0  ;;  %1953 = vmatprep.subr.bf16.mxu0 %v1952_v10  ;;  %v471_v20 = vld [vmem:[#allocation5 + $0x38] sm:$0xff]  ;;  %s2754_s10 = scalar_lea.vmem %s3085_s0, %s1648_s24  ;;  %v1987_v21 = vpack.c.bf16 %v590_v18, %v589_v17  ;;  %v591_v23 = vld [vmem:[#allocation7 + $0x30] sm:$0xff]  ;;  %v472_v25 = vld [vmem:[#allocation5 + $0x40] sm:$0xff]  ;;  %s3118_s17 = sld [smem:[#allocation17_spill]] }
  0xa6   : > { %v1960_v22 = vpack.c.bf16 %v471_v20, %v470_v19  ;;  %v592_v24 = vld [vmem:[#allocation7 + $0x38] sm:$0xff]  ;;  %v473_v26 = vld [vmem:[#allocation5 + $0x48] sm:$0xff]  ;;  %v2758_v27 = vld [vmem:[%s2754_s10] sm:$0xff]  ;;  %s1653_s21 = sshll.u32 %s2519_s19, 7  ;;  %s448_s30 = scalar_lea.vmem [#allocation11], %s1641_s22 }
  0xa7   : > { %1787 = vmatprep.mubr.f32.mxu0 %v2758_v27  ;;  %v1990_v28 = vpack.c.bf16 %v592_v24, %v591_v23  ;;  %v1964_v29 = vpack.c.bf16 %v473_v26, %v472_v25  ;;  %v593_v30 = vld [vmem:[#allocation7 + $0x40] sm:$0xff]  ;;  %v594_v31 = vld [vmem:[#allocation7 + $0x48] sm:$0xff]  ;;  %v474_v32 = vld [vmem:[#allocation5 + $0x50] sm:$0xff]  ;;  %v676_v24 = vlaneseq  ;;  %s1511_s20 = sshll.u32 %s448_s30, 4  ;;  %s3119_s23 = sld [smem:[#allocation18_spill]]  ;;  %s3043_s20 = int_to_ptr.vmem [resolvable:$true] %s1511_s20 }
  0xa8   : > { %1985 = vmatpush3.bf16.msra.mxu1 %v1984_v15  ;;  %1955 = vmatpush3.bf16.msra.mxu0 %v1952_v10  ;;  %v475_v33 = vld [vmem:[#allocation5 + $0x58] sm:$0xff]  ;;  %v1993_v34 = vpack.c.bf16 %v594_v31, %v593_v30  ;;  %v595_v36 = vld [vmem:[#allocation7 + $0x50] sm:$0xff]  ;;  %v476_v38 = vld [vmem:[#allocation5 + $0x60] sm:$0xff]  ;;  %s1498_s26 = scalar_lea.sflag [#allocation4], %s2726_s2  ;;  %p3120_p7 = scmp.ne.s32.totalorder %s3110_s27, 0 }
  0xa9   : > { %1986 = vmatprep.subr.bf16.mxu1 %v2437_v0  ;;  %1957 = vmatprep.subr.bf16.mxu0 %v1956_v16  ;;  %v1968_v35 = vpack.c.bf16 %v475_v33, %v474_v32  ;;  %v596_v37 = vld [vmem:[#allocation7 + $0x58] sm:$0xff]  ;;  %v477_v39 = vld [vmem:[#allocation5 + $0x68] sm:$0xff]  ;;  %v597_v42 = vld [vmem:[#allocation7 + $0x60] sm:$0xff]  ;;  %v2851_v26 = vshrl.u32 %v676_v24, 7  ;;  %s2442_s19 = smov [#allocation11]  }
  0xaa   : > { %v1996_v40 = vpack.c.bf16 %v596_v37, %v595_v36  ;;  %v1972_v41 = vpack.c.bf16 %v477_v39, %v476_v38  ;;  %v598_v43 = vld [vmem:[#allocation7 + $0x68] sm:$0xff]  ;;  %v478_v44 = vld [vmem:[#allocation5 + $0x70] sm:$0xff]  ;;  %v479_v45 = vld [vmem:[#allocation5 + $0x78] sm:$0xff]  ;;  %s2358_s22 = sshll.u32 %s2442_s19, 4  ;;  %s2359_s22 = int_to_ptr.vmem [resolvable:$false] %s2358_s22 }
  0xab   : > { %v1999_v46 = vpack.c.bf16 %v598_v43, %v597_v42  ;;  %v1976_v47 = vpack.c.bf16 %v479_v45, %v478_v44  ;;  %v599_v48 = vld [vmem:[#allocation7 + $0x70] sm:$0xff]  ;;  %v600_v49 = vld [vmem:[#allocation7 + $0x78] sm:$0xff]  ;;  %v794_v54 = vld [vmem:[%s3090_s5 + $0x10] sm:$0xff]  ;;  %p2361_p3 = scmp.lt.s32.totalorder %s3043_s20, %s2359_s22 }
  0xac   : > { %1988 = vmatpush3.bf16.msra.mxu1 %v1987_v21  ;;  %1959 = vmatpush3.bf16.msra.mxu0 %v1956_v16  ;;  %v792_v50 = vld [vmem:[%s3090_s5] sm:$0xff]  ;;  %v793_v51 = vld [vmem:[%s3090_s5 + $0x8] sm:$0xff]  ;;  %v2002_v52 = vpack.c.bf16 %v600_v49, %v599_v48  ;;  %v795_v55 = vld [vmem:[%s3090_s5 + $0x18] sm:$0xff]  ;;  %v2440_v21 = vmov 0  }
  0xad   : > { %1989 = vmatprep.subr.bf16.mxu1 %v2437_v0  ;;  %1961 = vmatprep.subr.bf16.mxu0 %v1960_v22  ;;  %v2004_v53 = vpack.c.bf16 %v793_v51, %v792_v50  ;;  %v2779_v56 = vld [vmem:[%s2732_s25] sm:$0xff]  ;;  %v2785_v58 = vld [vmem:[%s2754_s10 + $0x10] sm:$0xff]  ;;  %v2008_v59 = vpack.c.bf16 %v795_v55, %v794_v54  ;;  %v2798_v62 = vld [vmem:[%s2754_s10 + $0x18] sm:$0xff]  ;;  %s3041_s28 = scalar_lea.hbm %s3119_s23, %s1653_s21  ;;  %s2354_s25 = scalar_lea.vmem %s3043_s20, 128 }
  0xae   : > { %v2782_v57 = vld [vmem:[%s2754_s10 + $0x8] sm:$0xff]  ;;  %v796_v60 = vld [vmem:[%s3090_s5 + $0x20] sm:$0xff]  ;;  %v798_v3 = vld [vmem:[%s3090_s5 + $0x30] sm:$0xff]  ;;  %2178 = vset.pattern.permute.xlu0 %v2440_v21  ;;  %2179 = vset.pattern.permute.xlu1 %v2440_v21  ;;  %p2355_p5 = scmp.ne.s32.totalorder %s3043_s20, %s2354_s25 }
  0xaf   : > { %v797_v61 = vld [vmem:[%s3090_s5 + $0x28] sm:$0xff]  ;;  %v2801_v63 = vld [vmem:[%s2754_s10 + $0x20] sm:$0xff]  ;;  %v799_v4 = vld [vmem:[%s3090_s5 + $0x38] sm:$0xff] }
  0xb0   : > { %1991 = vmatpush3.bf16.msra.mxu1 %v1990_v28  ;;  %1963 = vmatpush3.bf16.msra.mxu0 %v1960_v22  ;;  %v2012_v2 = vpack.c.bf16 %v797_v61, %v796_v60  ;;  %v2814_v5 = vld [vmem:[%s2754_s10 + $0x28] sm:$0xff]  ;;  %v2817_v6 = vld [vmem:[%s2754_s10 + $0x30] sm:$0xff]  ;;  %v2016_v7 = vpack.c.bf16 %v799_v4, %v798_v3  ;;  %v800_v8 = vld [vmem:[%s3090_s5 + $0x40] sm:$0xff]  ;;  %v2441_v22 = vmov 1966171168   ;;  %p2356_p9 = pnand %p2355_p5, %p3120_p7 }
  0xb1   : > { %1992 = vmatprep.subr.bf16.mxu1 %v2437_v0  ;;  %1965 = vmatprep.subr.bf16.mxu0 %v1964_v29  ;;  %v801_v9 = vld [vmem:[%s3090_s5 + $0x48] sm:$0xff]  ;;  %v2828_v10 = vld [vmem:[%s2754_s10 + $0x38] sm:$0xff]  ;;  %v802_v12 = vld [vmem:[%s3090_s5 + $0x50] sm:$0xff]  ;;  %v674_v23 = vunpack.c.l.s4 %v2441_v22  ;;  %s2360_s10 = scalar_lea.vmem %s2359_s22, 256 }
  0xb2   : > { %v2020_v11 = vpack.c.bf16 %v801_v9, %v800_v8  ;;  %v803_v13 = vld [vmem:[%s3090_s5 + $0x58] sm:$0xff]  ;;  %v804_v15 = vld [vmem:[%s3090_s5 + $0x60] sm:$0xff]  ;;  %v805_v16 = vld [vmem:[%s3090_s5 + $0x68] sm:$0xff]  ;;  %p2357_p12 = pneg %p2356_p9  ;;  %p2362_p13 = scmp.lt.s32.totalorder %s2360_s10, %s2354_s25 }
  0xb3   : > { %v2024_v14 = vpack.c.bf16 %v803_v13, %v802_v12  ;;  %v2028_v17 = vpack.c.bf16 %v805_v16, %v804_v15  ;;  %v806_v18 = vld [vmem:[%s3090_s5 + $0x70] sm:$0xff]  ;;  %v807_v19 = vld [vmem:[%s3090_s5 + $0x78] sm:$0xff]  ;;  %v675_v25 = vunpack.c.0.s8 %v674_v23  ;;  %v1649_v45 = vld [vmem:[%s3089_s4] ss:$0 sm:$0xff] }
  0xb4   : > { %1994 = vmatpush3.bf16.msra.mxu1 %v1993_v34  ;;  %1967 = vmatpush3.bf16.msra.mxu0 %v1964_v29  ;;  %v2032_v20 = vpack.c.bf16 %v807_v19, %v806_v18  ;;  %v2855_v34 = vsub.s32 0, %v2851_v26  ;;  %p2363_p0 = por %p2362_p13, %p2361_p3 }
  0xb5   : > { %1995 = vmatprep.subr.bf16.mxu1 %v2437_v0  ;;  %1969 = vmatprep.subr.bf16.mxu0 %v1968_v35  ;;  %v678_v28 = vsub.s32 %v675_v25, %v2851_v26 }
  0xb6   : > { %p2364_p2 = pnand %p2363_p0, %p2357_p12 }
  0xb8   : > { %1997 = vmatpush3.bf16.msra.mxu1 %v1996_v40  ;;  %1971 = vmatpush3.bf16.msra.mxu0 %v1968_v35 }
  0xb9   : > { %1998 = vmatprep.subr.bf16.mxu1 %v2437_v0  ;;  %1973 = vmatprep.subr.bf16.mxu0 %v1972_v41 }
  0xbc   : > { %2000 = vmatpush3.bf16.msra.mxu1 %v1999_v46  ;;  %1975 = vmatpush3.bf16.msra.mxu0 %v1972_v41 }
  0xbd   : > { %2001 = vmatprep.subr.bf16.mxu1 %v2437_v0  ;;  %1977 = vmatprep.subr.bf16.mxu0 %v1976_v47 }
  0xc0   : > { %2003 = vmatpush3.bf16.msra.mxu1 %v2002_v52  ;;  %1979 = vmatpush3.bf16.msra.mxu0 %v1976_v47 }
  0xc1   : > { %2005 = vmatprep.subr.bf16.mxu0 %v2004_v53  ;;  %2036 = vmatprep.subr.bf16.mxu1 %v2437_v0 }
  0xc3   : > { %1832 = vmatmul.mubr.f32.vlgmr.msra.gmra.mrb[0].mxu1 %v2779_v56  ;;  %1788 = vmatmul.mubr.f32.vlgmr.msra.gmra.mrb[0].mxu0 %v2782_v57 }
  0xc4   : > { %1790 = vmatprep.mubr.f32.mxu0 %v2785_v58  ;;  %2007 = vmatpush3.bf16.msra.mxu0 %v2004_v53 }
  0xc5   : > { %2009 = vmatprep.subr.bf16.mxu0 %v2008_v59  ;;  %1910 = vmatprep.mubr.msk.f32.mxu1 %vm2438_vm0, %v2439_v1 }
  0xc7   : > { %1791 = vmatmul.mubr.f32.gmra.mrb[2].mxu0 %v2798_v62 }
  0xc8   : > { %1793 = vmatprep.mubr.f32.mxu0 %v2801_v63  ;;  %2011 = vmatpush3.bf16.msra.mxu0 %v2008_v59 }
  0xc9   : > { %2013 = vmatprep.subr.bf16.mxu0 %v2012_v2 }
  0xcb   : > { %1794 = vmatmul.mubr.f32.gmra.mrb[4].mxu0 %v2814_v5 }
  0xcc   : > { %1796 = vmatprep.mubr.f32.mxu0 %v2817_v6  ;;  %2015 = vmatpush3.bf16.msra.mxu0 %v2012_v2 }
  0xcd   : > { %2017 = vmatprep.subr.bf16.mxu0 %v2016_v7 }
  0xcf   : > { %1797 = vmatmul.mubr.f32.gmra.mrb[6].mxu0 %v2828_v10 }
  0xd0   : > { %2019 = vmatpush3.bf16.msra.mxu0 %v2016_v7 }
  0xd1   : > { %2021 = vmatprep.subr.bf16.mxu0 %v2020_v11 }
  0xd4   : > { %2023 = vmatpush3.bf16.msra.mxu0 %v2020_v11 }
  0xd5   : > { %2025 = vmatprep.subr.bf16.mxu0 %v2024_v14 }
  0xd8   : > { %2027 = vmatpush3.bf16.msra.mxu0 %v2024_v14 }
  0xd9   : > { %2029 = vmatprep.subr.bf16.mxu0 %v2028_v17 }
  0xdc   : > { %2031 = vmatpush3.bf16.msra.mxu0 %v2028_v17 }
  0xdd   : > { %2033 = vmatprep.subr.bf16.mxu0 %v2032_v20 }
  0xe0   : > { %2035 = vmatpush3.bf16.msra.mxu0 %v2032_v20 }
  0xe1   : > { %2060 = vmatprep.subr.bf16.mxu0 %v2437_v0 }
 0x196   : > { %v667_v29 = vpop.f32.mrb[0].mxu1  ;;  %v1789_v30 = vpop.f32.mrb[0].mxu0 }
 0x197   : > { %v672_v31 = vcombine.high %v667_v29, %v667_v29  ;;  %v679_v32 = vrot.slane %v667_v29, %v678_v28  ;;  %v1833_v33 = vpop.f32.mrb[1].mxu1  ;;  %v546_v35 = vpop.f32.mrb[1].mxu0 }
 0x199   : > { %v686_v36 = vrot.slane %v672_v31, %v678_v28  ;;  %v687_v37 = vcombine.high %v679_v32, %v679_v32  ;;  %v695_v38 = vrot.slane %v679_v32, %v678_v28 }
 0x19a   : > { %v1792_v39 = vpop.f32.mrb[2].mxu0 }
 0x19b   : > { %v688_v40 = vcombine.high %v686_v36, %v686_v36  ;;  %v709_v41 = vrot.slane %v687_v37, %v678_v28  ;;  %v724_v42 = vrot.slane %v695_v38, %v2855_v34  ;;  %v556_v43 = vpop.f32.mrb[3].mxu0  ;;  %v717_v44 = vcombine.high %v695_v38, %v695_v38 }
 0x19c   : > { %v702_v46 = vrot.slane %v686_v36, %v678_v28 }
 0x19d   : > { %v728_v47 = vrot.slane %v709_v41, %v2855_v34  ;;  %v761_v48 = vadd.f32 %v724_v42, %v546_v35  ;;  %v719_v49 = vcombine.high %v709_v41, %v709_v41  ;;  %v732_v50 = vrot.slane %v717_v44, %v2855_v34 }
 0x19e   : > { %v1795_v51 = vpop.f32.mrb[4].mxu0  ;;  %v716_v52 = vrot.slane %v688_v40, %v678_v28  ;;  %v740_v53 = vrot.slane %v702_v46, %v2855_v34  ;;  %v718_v54 = vcombine.high %v702_v46, %v702_v46 }
 0x19f   : > { %v762_v55 = vadd.f32 %v1789_v30, %v728_v47  ;;  %v776_v59 = vadd.f32 %v1649_v45, %v761_v48  ;;  %v736_v60 = vrot.slane %v719_v49, %v2855_v34  ;;  %v763_v61 = vadd.f32 %v732_v50, %v556_v43  ;;  %v566_v2 = vpop.f32.mrb[5].mxu0 }
 0x1a0   : > { %v744_v3 = vrot.slane %v716_v52, %v2855_v34  ;;  %v765_v4 = vadd.f32 %v740_v53, %v566_v2  ;;  %v720_v7 = vcombine.high %v716_v52, %v716_v52  ;;  %v748_v16 = vrot.slane %v718_v54, %v2855_v34 }
 0x1a1   : > { %v777_v8 = vadd.f32 %v1649_v45, %v762_v55  ;;  %v784_v9 = vmax.f32 %v776_v59, 0.0  ;;  %v764_v11 = vadd.f32 %v1792_v39, %v736_v60  ;;  %v778_v12 = vadd.f32 %v1649_v45, %v763_v61 }
 0x1a2   : > { %v766_v13 = vadd.f32 %v1795_v51, %v744_v3  ;;  %v1798_v14 = vpop.f32.mrb[6].mxu0  ;;  %v752_v15 = vrot.slane %v720_v7, %v2855_v34  ;;  %v780_v21 = vadd.f32 %v1649_v45, %v765_v4  ;;  %v946_v43 = vand.u32 127, %v676_v24 }
 0x1a3   : > { %v785_v17 = vmax.f32 %v777_v8, 0.0  ;;  %v779_v18 = vadd.f32 %v1649_v45, %v764_v11  ;;  %v786_v19 = vmax.f32 %v778_v12, 0.0  ;;  %1866 = vmatprep.mubr.f32.mxu0 %v784_v9  ;;  %v576_v20 = vpop.f32.mrb[7].mxu0 }
 0x1a4   : > { %v768_v22 = vadd.f32 %v1798_v14, %v752_v15  ;;  %v767_v23 = vadd.f32 %v748_v16, %v576_v20  ;;  %v781_v28 = vadd.f32 %v1649_v45, %v766_v13  ;;  %v788_v29 = vmax.f32 %v780_v21, 0.0 }
 0x1a5   : > { %1867 = vmatmul.mubr.f32.vlgmr.msra.gmra.mrb[8].mxu0 %v785_v17  ;;  %v787_v25 = vmax.f32 %v779_v18, 0.0  ;;  %v1005_v14 = vsub.s32 1, %v2851_v26  ;;  %v1009_v15 = vsub.s32 2, %v2851_v26 }
 0x1a6   : > { %1869 = vmatprep.mubr.f32.mxu0 %v786_v19  ;;  %v782_v30 = vadd.f32 %v1649_v45, %v767_v23  ;;  %v789_v31 = vmax.f32 %v781_v28, 0.0  ;;  %v783_v32 = vadd.f32 %v1649_v45, %v768_v22  ;;  %v2893_v45 = vsub.s32 %v946_v43, %v2851_v26 }
 0x1a7   : > { %v1013_v19 = vsub.s32 3, %v2851_v26 }
 0x1a8   : > { %v790_v33 = vmax.f32 %v782_v30, 0.0  ;;  %v791_v35 = vmax.f32 %v783_v32, 0.0 }
 0x1a9   : > { %1870 = vmatmul.mubr.f32.gmra.mrb[10].mxu0 %v787_v25  ;;  %v1017_v25 = vsub.s32 4, %v2851_v26 }
 0x1aa   : > { %1872 = vmatprep.mubr.f32.mxu0 %v788_v29 }
 0x1ad   : > { %1873 = vmatmul.mubr.f32.gmra.mrb[12].mxu0 %v789_v31  ;;  %v1021_v31 = vsub.s32 5, %v2851_v26 }
 0x1ae   : > { %1875 = vmatprep.mubr.f32.mxu0 %v790_v33 }
 0x1b1   : > { %1876 = vmatmul.mubr.f32.gmra.mrb[14].mxu0 %v791_v35 }
 0x1b2   : > { %1945 = vmatprep.mubr.msk.f32.mxu0 %vm2438_vm0, %v2439_v1 }
 0x278   : > { %v2870_v36 = vpop.f32.mrb[8].mxu0 }
 0x279   : > { %925 = vperm.xlu0 %2178, %v2870_v36   ;;  %v874_v37 = vpop.f32.mrb[9].mxu0 }
 0x27c   : > { %v2873_v38 = vpop.f32.mrb[10].mxu0 }
 0x27d   : > { %922 = vperm.xlu0 %2178, %v874_v37   ;;  %931 = vperm.xlu1 %2179, %v2873_v38   ;;  %v2876_v39 = vpop.f32.mrb[11].mxu0 }
 0x280   : > { %v2878_v40 = vpop.f32.mrb[12].mxu0 }
 0x281   : > { %928 = vperm.xlu1 %2179, %v2876_v39   ;;  %v2881_v41 = vpop.f32.mrb[13].mxu0 }
 0x282   : > { %934 = vperm.xlu0 %2178, %v2881_v41  }
 0x284   : > { %v2884_v1 = vpop.f32.mrb[14].mxu0 }
 0x285   : > { %937 = vperm.xlu1 %2179, %v2878_v40   ;;  %v2887_v42 = vpop.f32.mrb[15].mxu0 }
 0x286   : > { %940 = vperm.xlu0 %2178, %v2887_v42  }
 0x289   : > { %943 = vperm.xlu1 %2179, %v2884_v1  }
 0x2f8   : > { %v926_v44 = vpop.permute.xlu0 %925 }
 0x2f9   : > { %v954_v49 = vrot.slane %v926_v44, %v2893_v45 }
 0x2fc   : > { %v923_v46 = vpop.permute.xlu0 %922  ;;  %v932_v47 = vpop.permute.xlu1 %931 }
 0x2fd   : > { %v950_v48 = vrot.slane %v923_v46, %v2893_v45  ;;  %v962_v24 = vrot.slane %v932_v47, %v2893_v45  ;;  %v1029_v46 = vsub.s32 7, %v2851_v26 }
 0x2ff   : > { %v980_v53 = vsel %vm979_vm1, %v954_v49, %v950_v48 }
 0x300   : > { %v929_v50 = vpop.permute.xlu1 %928 }
 0x301   : > { %v958_v51 = vrot.slane %v929_v50, %v2893_v45  ;;  %v935_v52 = vpop.permute.xlu0 %934 }
 0x302   : > { %v966_v54 = vrot.slane %v935_v52, %v2893_v45 }
 0x303   : > { %v982_v55 = vsel %vm981_vm2, %v958_v51, %v980_v53 }
 0x304   : > { %v984_v59 = vsel %vm983_vm3, %v962_v24, %v982_v55  ;;  %v938_v60 = vpop.permute.xlu1 %937 }
 0x305   : > { %v986_v61 = vsel %vm985_vm4, %v966_v54, %v984_v59  ;;  %v970_v2 = vrot.slane %v938_v60, %v2893_v45  ;;  %v941_v3 = vpop.permute.xlu0 %940 }
 0x306   : > { %v974_v4 = vrot.slane %v941_v3, %v2893_v45 }
 0x307   : > { %v988_v7 = vsel %vm987_vm5, %v970_v2, %v986_v61 }
 0x308   : > { %v944_v8 = vpop.permute.xlu1 %943  ;;  %v990_v11 = vsel %vm989_vm6, %v974_v4, %v988_v7 }
 0x309   : > { %v978_v9 = vrot.slane %v944_v8, %v2893_v45 }
 0x30b   : > { %v992_v12 = vsel %vm991_vm7, %v978_v9, %v990_v11 }
 0x30c   : > { %v995_v13 = vsel %vm994_vm8, %v992_v12, -inf }
 0x30d   : > { %996 = vmax.xlane.f32.xlu0 %v995_v13 }
 0x39a   : > { %v997_v16 = vpop.xlane.xlu0 %996 }
 0x39b   : > { %v1002_v17 = vrot.slane %v997_v16, %v2855_v34  ;;  %v1006_v18 = vrot.slane %v997_v16, %v1005_v14  ;;  %v1010_v20 = vrot.slane %v997_v16, %v1009_v15  ;;  %v1014_v28 = vrot.slane %v997_v16, %v1013_v19 }
 0x39c   : > { %v1018_v32 = vrot.slane %v997_v16, %v1017_v25 }
 0x39d   : > { %v1039_v21 = vsub.f32 %v874_v37, %v1002_v17  ;;  %v1040_v22 = vsub.f32 %v2870_v36, %v1006_v18  ;;  %v1041_v29 = vsub.f32 %v2876_v39, %v1010_v20  ;;  %v1042_v33 = vsub.f32 %v2873_v38, %v1014_v28 }
 0x39e   : > { %v1025_v36 = vsub.s32 6, %v2851_v26  ;;  %v1022_v37 = vrot.slane %v997_v16, %v1021_v31  ;;  %v1043_v43 = vsub.f32 %v2881_v41, %v1018_v32  ;;  %v1030_v41 = vrot.slane %v997_v16, %v1029_v46  ;;  %v1293_v26 = vld [vmem:[#allocation8 + $0x10] sm:$0xff] }
 0x39f   : > { %v1047_v23 = vmul.f32 1.442695, %v1039_v21  ;;  %v1049_v30 = vmul.f32 1.442695, %v1040_v22  ;;  %v1051_v35 = vmul.f32 1.442695, %v1041_v29 }
 0x3a0   : > { %v1053_v39 = vmul.f32 1.442695, %v1042_v33  ;;  %v1026_v38 = vrot.slane %v997_v16, %v1025_v36  ;;  %v1044_v47 = vsub.f32 %v2878_v40, %v1022_v37  ;;  %v1055_v48 = vmul.f32 1.442695, %v1043_v43 }
 0x3a1   : > { %2180 = vpow2.f32 %v1047_v23  ;;  %v1046_v53 = vsub.f32 %v2884_v1, %v1030_v41 }
 0x3a2   : > { %2182 = vpow2.f32 %v1049_v30  ;;  %v1045_v50 = vsub.f32 %v2887_v42, %v1026_v38  ;;  %v1057_v51 = vmul.f32 1.442695, %v1044_v47 }
 0x3a3   : > { %2184 = vpow2.f32 %v1051_v35  ;;  %v1061_v54 = vmul.f32 1.442695, %v1046_v53 }
 0x3a4   : > { %2186 = vpow2.f32 %v1053_v39  ;;  %v1059_v24 = vmul.f32 1.442695, %v1045_v50 }
 0x3a5   : > { %2188 = vpow2.f32 %v1055_v48 }
 0x3a6   : > { %2190 = vpow2.f32 %v1057_v51 }
 0x3a7   : > { %2192 = vpow2.f32 %v1059_v24  ;;  %v1291_v24 = vld [vmem:[#allocation8] sm:$0xff] }
 0x3a8   : > { %2194 = vpow2.f32 %v1061_v54  ;;  %v1292_v54 = vld [vmem:[#allocation8 + $0x8] sm:$0xff] }
 0x3ab   : > { %v2932_v44 = vpop.eup %2180 }
 0x3ac   : > { %1072 = vperm.xlu1 %2179, %v2932_v44   ;;  %v2183_v49 = vpop.eup %2182 }
 0x3ad   : > { %v2942_v52 = vpop.eup %2184 }
 0x3ae   : > { %v2946_v40 = vpop.eup %2186 }
 0x3af   : > { %v2949_v55 = vpop.eup %2188 }
 0x3b0   : > { %1075 = vperm.xlu1 %2179, %v2183_v49   ;;  %v2952_v42 = vpop.eup %2190 }
 0x3b1   : > { %v2955_v59 = vpop.eup %2192 }
 0x3b2   : > { %v2958_v1 = vpop.eup %2194 }
 0x3b4   : > { %1078 = vperm.xlu1 %2179, %v2942_v52  }
 0x3b8   : > { %1081 = vperm.xlu1 %2179, %v2946_v40  }
 0x3bc   : > { %1084 = vperm.xlu1 %2179, %v2949_v55  }
 0x3c0   : > { %1087 = vperm.xlu1 %2179, %v2952_v42  }
 0x3c4   : > { %1090 = vperm.xlu1 %2179, %v2955_v59  }
 0x3c8   : > { %1093 = vperm.xlu1 %2179, %v2958_v1  }
 0x42b   : > { %v1073_v60 = vpop.permute.xlu1 %1072 }
 0x42c   : > { %v1098_v11 = vrot.slane %v1073_v60, %v2893_v45 }
 0x42f   : > { %v1076_v61 = vpop.permute.xlu1 %1075 }
 0x430   : > { %v1102_v8 = vrot.slane %v1076_v61, %v2893_v45  ;;  %v2037_v61 = vpack.c.bf16 %v1292_v54, %v1291_v24 }
 0x432   : > { %v1127_v17 = vsel %vm979_vm1, %v1102_v8, %v1098_v11  ;;  %2038 = vmatpush3.bf16.msra.mxu1 %v2037_v61  ;;  %v1296_v11 = vld [vmem:[#allocation8 + $0x28] sm:$0xff] }
 0x433   : > { %v1079_v2 = vpop.permute.xlu1 %1078  ;;  %2039 = vmatprep.subr.bf16.mxu1 %v2437_v0 }
 0x434   : > { %v1106_v9 = vrot.slane %v1079_v2, %v2893_v45  ;;  %v1386_v2 = vld [vmem:[#allocation10 + $0x8] sm:$0xff] }
 0x436   : > { %v1128_v20 = vsel %vm981_vm2, %v1106_v9, %v1127_v17  ;;  %v1390_v17 = vld [vmem:[#allocation10 + $0x28] sm:$0xff] }
 0x437   : > { %v1082_v3 = vpop.permute.xlu1 %1081 }
 0x438   : > { %v1110_v12 = vrot.slane %v1082_v3, %v2893_v45 }
 0x43a   : > { %v1129_v22 = vsel %vm983_vm3, %v1110_v12, %v1128_v20 }
 0x43b   : > { %v1085_v4 = vpop.permute.xlu1 %1084 }
 0x43c   : > { %v1114_v13 = vrot.slane %v1085_v4, %v2893_v45 }
 0x43e   : > { %v1130_v23 = vsel %vm985_vm4, %v1114_v13, %v1129_v22 }
 0x43f   : > { %v1088_v7 = vpop.permute.xlu1 %1087 }
 0x440   : > { %v1118_v18 = vrot.slane %v1088_v7, %v2893_v45  ;;  %v1388_v7 = vld [vmem:[#allocation10 + $0x18] sm:$0xff] }
 0x442   : > { %v1131_v29 = vsel %vm987_vm5, %v1118_v18, %v1130_v23  ;;  %v1391_v23 = vld [vmem:[#allocation10 + $0x30] sm:$0xff] }
 0x443   : > { %v1091_v16 = vpop.permute.xlu1 %1090 }
 0x444   : > { %v1122_v21 = vrot.slane %v1091_v16, %v2893_v45  ;;  %v1389_v16 = vld [vmem:[#allocation10 + $0x20] sm:$0xff] }
 0x445   : > { %v2067_v18 = vpack.c.bf16 %v1390_v17, %v1389_v16 }
 0x446   : > { %v1132_v32 = vsel %vm989_vm6, %v1122_v21, %v1131_v29  ;;  %v1298_v21 = vld [vmem:[#allocation8 + $0x38] sm:$0xff] }
 0x447   : > { %v1094_v28 = vpop.permute.xlu1 %1093 }
 0x448   : > { %v1126_v30 = vrot.slane %v1094_v28, %v2893_v45  ;;  %v1392_v28 = vld [vmem:[#allocation10 + $0x38] sm:$0xff] }
 0x449   : > { %v2070_v29 = vpack.c.bf16 %v1392_v28, %v1391_v23 }
 0x44a   : > { %v1133_v33 = vsel %vm991_vm7, %v1126_v30, %v1132_v32  ;;  %v1299_v30 = vld [vmem:[#allocation8 + $0x40] sm:$0xff]  ;;  %v1300_v32 = vld [vmem:[#allocation8 + $0x48] sm:$0xff] }
 0x44b   : > { %v1135_v35 = vsel %vm994_vm8, %v1133_v33, 0.0  ;;  %v2049_v33 = vpack.c.bf16 %v1300_v32, %v1299_v30 }
 0x44c   : > { %1136 = vadd.xlane.f32.xlu0 %v1135_v35  ;;  %v1394_v35 = vld [vmem:[#allocation10 + $0x48] sm:$0xff] }
 0x4d9   : > { %v1137_v37 = vpop.xlane.xlu0 %1136 }
 0x4da   : > { %v1146_v43 = vrot.slane %v1137_v37, %v1005_v14  ;;  %v1142_v39 = vrot.slane %v1137_v37, %v2855_v34  ;;  %v1150_v38 = vrot.slane %v1137_v37, %v1009_v15  ;;  %v1154_v45 = vrot.slane %v1137_v37, %v1013_v19 }
 0x4db   : > { %v1158_v47 = vrot.slane %v1137_v37, %v1017_v25  ;;  %v1162_v34 = vrot.slane %v1137_v37, %v1021_v31  ;;  %v1166_v19 = vrot.slane %v1137_v37, %v1025_v36  ;;  %v1170_v25 = vrot.slane %v1137_v37, %v1029_v46  ;;  %v1385_v36 = vld [vmem:[#allocation10] sm:$0xff]  ;;  %v1294_v46 = vld [vmem:[#allocation8 + $0x18] sm:$0xff] }
 0x4dc   : > { %2196 = vrcp.f32 %v1146_v43  ;;  %v2040_v4 = vpack.c.bf16 %v1294_v46, %v1293_v26  ;;  %v1301_v43 = vld [vmem:[#allocation8 + $0x50] sm:$0xff] }
 0x4dd   : > { %2198 = vrcp.f32 %v1142_v39  ;;  %v1302_v39 = vld [vmem:[#allocation8 + $0x58] sm:$0xff] }
 0x4de   : > { %2200 = vrcp.f32 %v1150_v38  ;;  %2041 = vmatpush3.bf16.msra.mxu1 %v2040_v4  ;;  %v2052_v38 = vpack.c.bf16 %v1302_v39, %v1301_v43 }
 0x4df   : > { %2202 = vrcp.f32 %v1154_v45  ;;  %2042 = vmatprep.subr.bf16.mxu1 %v2437_v0  ;;  %v1395_v45 = vld [vmem:[#allocation10 + $0x50] sm:$0xff] }
 0x4e0   : > { %2204 = vrcp.f32 %v1158_v47  ;;  %v1396_v47 = vld [vmem:[#allocation10 + $0x58] sm:$0xff] }
 0x4e1   : > { %2206 = vrcp.f32 %v1162_v34 }
 0x4e2   : > { %2208 = vrcp.f32 %v1166_v19 }
 0x4e3   : > { %2210 = vrcp.f32 %v1170_v25  ;;  %v1399_v25 = vld [vmem:[#allocation10 + $0x70] sm:$0xff] }
 0x4e6   : > { %v2197_v48 = vpop.eup %2196 }
 0x4e7   : > { %v2199_v41 = vpop.eup %2198  ;;  %v1182_v50 = vmul.f32 %v2197_v48, %v2183_v49  ;;  %v2076_v48 = vpack.c.bf16 %v1396_v47, %v1395_v45 }
 0x4e8   : > { %v1180_v14 = vmul.f32 %v2199_v41, %v2932_v44  ;;  %v2201_v15 = vpop.eup %2200  ;;  %v1303_v41 = vld [vmem:[#allocation8 + $0x60] sm:$0xff] }
 0x4e9   : > { %1202 = vperm.xlu0 %2178, %v1182_v50   ;;  %v1184_v51 = vmul.f32 %v2201_v15, %v2942_v52  ;;  %v2203_v53 = vpop.eup %2202  ;;  %v2061_v52 = vpack.c.bf16 %v1386_v2, %v1385_v36  ;;  %v1304_v50 = vld [vmem:[#allocation8 + $0x68] sm:$0xff] }
 0x4ea   : > { %1197 = vperm.xlu1 %2179, %v1180_v14   ;;  %v1186_v49 = vmul.f32 %v2203_v53, %v2946_v40  ;;  %v2205_v31 = vpop.eup %2204  ;;  %v2055_v34 = vpack.c.bf16 %v1304_v50, %v1303_v41  ;;  %v1397_v14 = vld [vmem:[#allocation10 + $0x60] sm:$0xff]  ;;  %v1398_v15 = vld [vmem:[#allocation10 + $0x68] sm:$0xff]  ;;  %v1306_v53 = vld [vmem:[#allocation8 + $0x78] sm:$0xff] }
 0x4eb   : > { %v1188_v44 = vmul.f32 %v2205_v31, %v2949_v55  ;;  %v2207_v60 = vpop.eup %2206  ;;  %2062 = vmatpush3.bf16.msra.mxu0 %v2061_v52  ;;  %v1387_v55 = vld [vmem:[#allocation10 + $0x10] sm:$0xff]  ;;  %v2079_v19 = vpack.c.bf16 %v1398_v15, %v1397_v14  ;;  %v1400_v31 = vld [vmem:[#allocation10 + $0x78] sm:$0xff] }
 0x4ec   : > { %v1190_v3 = vmul.f32 %v2207_v60, %v2952_v42  ;;  %v2209_v40 = vpop.eup %2208  ;;  %2063 = vmatprep.subr.bf16.mxu0 %v2437_v0  ;;  %v2064_v8 = vpack.c.bf16 %v1388_v7, %v1387_v55  ;;  %v1295_v42 = vld [vmem:[#allocation8 + $0x20] sm:$0xff] }
 0x4ed   : > { %v1192_v9 = vmul.f32 %v2209_v40, %v2955_v59  ;;  %v2211_v12 = vpop.eup %2210  ;;  %v2043_v13 = vpack.c.bf16 %v1296_v11, %v1295_v42  ;;  %v1297_v59 = vld [vmem:[#allocation8 + $0x30] sm:$0xff] }
 0x4ee   : > { %1207 = vperm.xlu1 %2179, %v1184_v51   ;;  %v1194_v20 = vmul.f32 %v2211_v12, %v2958_v1  ;;  %v2046_v22 = vpack.c.bf16 %v1298_v21, %v1297_v59  ;;  %v1393_v1 = vld [vmem:[#allocation10 + $0x40] sm:$0xff]  ;;  %v1305_v51 = vld [vmem:[#allocation8 + $0x70] sm:$0xff] }
 0x4ef   : > { %2065 = vmatpush3.bf16.msra.mxu0 %v2064_v8  ;;  %2044 = vmatpush3.bf16.msra.mxu1 %v2043_v13  ;;  %v2073_v37 = vpack.c.bf16 %v1394_v35, %v1393_v1 }
 0x4f0   : > { %2066 = vmatprep.subr.bf16.mxu0 %v2437_v0  ;;  %2045 = vmatprep.subr.bf16.mxu1 %v2437_v0 }
 0x4f2   : > { %1212 = vperm.xlu1 %2179, %v1186_v49   ;;  %v2058_v49 = vpack.c.bf16 %v1306_v53, %v1305_v51 }
 0x4f3   : > { %2068 = vmatpush3.bf16.msra.mxu0 %v2067_v18  ;;  %2047 = vmatpush3.bf16.msra.mxu1 %v2046_v22 }
 0x4f4   : > { %2069 = vmatprep.subr.bf16.mxu0 %v2437_v0  ;;  %2048 = vmatprep.subr.bf16.mxu1 %v2437_v0 }
 0x4f6   : > { %1217 = vperm.xlu1 %2179, %v1188_v44   ;;  %v2082_v44 = vpack.c.bf16 %v1400_v31, %v1399_v25 }
 0x4f7   : > { %2071 = vmatpush3.bf16.msra.mxu0 %v2070_v29  ;;  %2050 = vmatpush3.bf16.msra.mxu1 %v2049_v33 }
 0x4f8   : > { %2072 = vmatprep.subr.bf16.mxu0 %v2437_v0  ;;  %2051 = vmatprep.subr.bf16.mxu1 %v2437_v0 }
 0x4fa   : > { %1222 = vperm.xlu1 %2179, %v1190_v3  }
 0x4fb   : > { %2074 = vmatpush3.bf16.msra.mxu0 %v2073_v37  ;;  %2053 = vmatpush3.bf16.msra.mxu1 %v2052_v38 }
 0x4fc   : > { %2075 = vmatprep.subr.bf16.mxu0 %v2437_v0  ;;  %2054 = vmatprep.subr.bf16.mxu1 %v2437_v0 }
 0x4fe   : > { %1227 = vperm.xlu1 %2179, %v1192_v9  }
 0x4ff   : > { %2077 = vmatpush3.bf16.msra.mxu0 %v2076_v48  ;;  %2056 = vmatpush3.bf16.msra.mxu1 %v2055_v34 }
 0x500   : > { %2078 = vmatprep.subr.bf16.mxu0 %v2437_v0  ;;  %2057 = vmatprep.subr.bf16.mxu1 %v2437_v0 }
 0x502   : > { %1232 = vperm.xlu1 %2179, %v1194_v20  }
 0x503   : > { %2080 = vmatpush3.bf16.msra.mxu0 %v2079_v19  ;;  %2059 = vmatpush3.bf16.msra.mxu1 %v2058_v49 }
 0x504   : > { %2081 = vmatprep.subr.bf16.mxu0 %v2437_v0 }
 0x506   : > { %1911 = vmatmul.mubr.f32.vlgmr.msra.gmra.mrb[2].mxu1 %v2779_v56 }
 0x507   : > { %2083 = vmatpush3.bf16.msra.mxu0 %v2082_v44 }
 0x568   : > { %v1203_v54 = vpop.permute.xlu0 %1202 }
 0x569   : > { %v1198_v24 = vpop.permute.xlu1 %1197  ;;  %v1236_v60 = vmul.f32 %v1203_v54, %v2782_v57 }
 0x56a   : > { %v1235_v36 = vmul.f32 %v1198_v24, %v2758_v27 }
 0x56b   : > { %v1249_v52 = vrot.slane %v1236_v60, 4 }
 0x56c   : > { %v1243_v26 = vrot.slane %v1235_v36, 4 }
 0x56d   : > { %v1208_v61 = vpop.permute.xlu1 %1207  ;;  %v1250_v4 = vadd.f32 %v1249_v52, %v1236_v60 }
 0x56e   : > { %v1237_v2 = vmul.f32 %v1208_v61, %v2785_v58  ;;  %v1244_v7 = vadd.f32 %v1243_v26, %v1235_v36 }
 0x56f   : > { %v1251_v42 = vrot.slane %v1250_v4, 2 }
 0x570   : > { %v1255_v40 = vrot.slane %v1237_v2, 4  ;;  %v1245_v27 = vrot.slane %v1244_v7, 2 }
 0x571   : > { %v1213_v3 = vpop.permute.xlu1 %1212 }
 0x572   : > { %v1238_v46 = vmul.f32 %v1213_v3, %v2798_v62  ;;  %v1256_v8 = vadd.f32 %v1255_v40, %v1237_v2  ;;  %v1252_v62 = vadd.f32 %v1251_v42, %v1250_v4  ;;  %v1246_v59 = vadd.f32 %v1245_v27, %v1244_v7 }
 0x574   : > { %v1261_v0 = vrot.slane %v1238_v46, 4  ;;  %v1257_v13 = vrot.slane %v1256_v8, 2  ;;  %v1253_v30 = vrot.slane %v1252_v62, 1  ;;  %v1247_v1 = vrot.slane %v1246_v59, 1 }
 0x575   : > { %v1218_v55 = vpop.permute.xlu1 %1217 }
 0x576   : > { %v1239_v56 = vmul.f32 %v1218_v55, %v2801_v63  ;;  %v1262_v9 = vadd.f32 %v1261_v0, %v1238_v46  ;;  %v1258_v63 = vadd.f32 %v1257_v13, %v1256_v8  ;;  %v1254_v47 = vadd.f32 %v1253_v30, %v1252_v62  ;;  %v1650_v46 = vld [vmem:[%s3092_s7] ss:$0 sm:$0xff] }
 0x577   : > { %v1248_v41 = vadd.f32 %v1247_v1, %v1246_v59  ;;  %v1651_v0 = vld [vmem:[%s3118_s17] ss:$0 sm:$0xff] }
 0x578   : > { %v1267_v57 = vrot.slane %v1239_v56, 4  ;;  %v1263_v16 = vrot.slane %v1262_v9, 2  ;;  %v1259_v43 = vrot.slane %v1258_v63, 1 }
 0x579   : > { %v1223_v11 = vpop.permute.xlu1 %1222  ;;  %v1416_v25 = vsel %vm979_vm1, %v1254_v47, %v1248_v41 }
 0x57a   : > { %v1268_v12 = vadd.f32 %v1267_v57, %v1239_v56  ;;  %v1240_v58 = vmul.f32 %v1223_v11, %v2814_v5  ;;  %v1264_v23 = vadd.f32 %v1263_v16, %v1262_v9  ;;  %v1260_v14 = vadd.f32 %v1259_v43, %v1258_v63 }
 0x57c   : > { %v1273_v17 = vrot.slane %v1240_v58, 4  ;;  %v1269_v18 = vrot.slane %v1268_v12, 2  ;;  %v1265_v39 = vrot.slane %v1264_v23, 1 }
 0x57d   : > { %v1228_v20 = vpop.permute.xlu1 %1227 }
 0x57e   : > { %v1274_v21 = vadd.f32 %v1273_v17, %v1240_v58  ;;  %v1241_v22 = vmul.f32 %v1228_v20, %v2817_v6  ;;  %v1270_v32 = vadd.f32 %v1269_v18, %v1268_v12  ;;  %v1266_v15 = vadd.f32 %v1265_v39, %v1264_v23 }
 0x580   : > { %v1275_v28 = vrot.slane %v1274_v21, 2  ;;  %v1279_v29 = vrot.slane %v1241_v22, 4  ;;  %v1271_v48 = vrot.slane %v1270_v32, 1 }
 0x581   : > { %v1233_v33 = vpop.permute.xlu1 %1232 }
 0x582   : > { %v1276_v35 = vadd.f32 %v1275_v28, %v1274_v21  ;;  %v1280_v5 = vadd.f32 %v1279_v29, %v1241_v22  ;;  %v1242_v37 = vmul.f32 %v1233_v33, %v2828_v10  ;;  %v1272_v53 = vadd.f32 %v1271_v48, %v1270_v32 }
 0x583   : > { %v1417_v10 = vsel %vm981_vm2, %v1260_v14, %v1416_v25 }
 0x584   : > { %v1281_v38 = vrot.slane %v1280_v5, 2  ;;  %v1285_v45 = vrot.slane %v1242_v37, 4  ;;  %v1277_v6 = vrot.slane %v1276_v35, 1  ;;  %v1418_v24 = vsel %vm983_vm3, %v1266_v15, %v1417_v10 }
 0x585   : > { %v1419_v60 = vsel %vm985_vm4, %v1272_v53, %v1418_v24 }
 0x586   : > { %v1282_v50 = vadd.f32 %v1281_v38, %v1280_v5  ;;  %v1286_v34 = vadd.f32 %v1285_v45, %v1242_v37  ;;  %v1278_v49 = vadd.f32 %v1277_v6, %v1276_v35 }
 0x588   : > { %v1283_v19 = vrot.slane %v1282_v50, 1  ;;  %v1287_v51 = vrot.slane %v1286_v34, 2  ;;  %v1420_v36 = vsel %vm987_vm5, %v1278_v49, %v1419_v60 }
 0x58a   : > { %v1288_v31 = vadd.f32 %v1287_v51, %v1286_v34  ;;  %v1284_v44 = vadd.f32 %v1283_v19, %v1282_v50 }
 0x58c   : > { %v1289_v54 = vrot.slane %v1288_v31, 1  ;;  %v1421_v2 = vsel %vm989_vm6, %v1284_v44, %v1420_v36 }
 0x58e   : > { %v1290_v61 = vadd.f32 %v1289_v54, %v1288_v31 }
 0x590   : > { %v1422_v52 = vsel %vm991_vm7, %v1290_v61, %v1421_v2 }
 0x591   : > { %1946 = vmatmul.mubr.f32.vlgmr.msra.gmra.mrb[16].mxu0 %v1422_v52 }
 0x5d9   : > { %v1380_v3 = vpop.f32.mrb[2].mxu1 }
 0x5da   : > { %v1912_v26 = vpop.f32.mrb[3].mxu1  ;;  %v1381_v40 = vadd.f32 %v1650_v46, %v1380_v3 }
 0x5dc   : > { %v1384_v55 = vmax.f32 %v1381_v40, 0.0 }
 0x664   : > { %v1490_v4 = vpop.f32.mrb[16].mxu0 }
 0x665   : > { %v1491_v7 = vadd.f32 %v1651_v0, %v1490_v4  ;;  %v1947_v56 = vpop.f32.mrb[17].mxu0 }
 0x667   : > { %v1494_v8 = vmax.f32 %v1491_v7, 0.0 }
 0x669   : > { %v1495_v9 = vmul.f32 %v1494_v8, %v1384_v55 }
 0x66b   : > { %1496 = vst [vmem:[%s448_s30] sm:$0xff] %v1495_v9 }
 0x66c   : > { %2367 = shalt.err (!%p2364_p2)
}
 0x66d   : > { %s2368_s2 = scalar_lea.hbm %s3041_s28, 128  ;;  %s2372_s21 = scalar_lea.hbm %s3119_s23, 256 }
 0x66e   : > { %p2369_p8 = scmp.ne.s32.totalorder %s3041_s28, %s2368_s2  ;;  %p2373_p11 = scmp.lt.u32.totalorder %s3041_s28, %s3119_s23 }
 0x66f   : > { %p2374_p1 = scmp.lt.u32.totalorder %s2372_s21, %s2368_s2  ;;  %p2376_p5 = scmp.lt.u32.totalorder %s2368_s2, %s3041_s28 }
 0x670   : > { %p2370_p4 = pnand %p2369_p8, %p3120_p7 }
 0x671   : > { %p2375_p6 = por %p2374_p1, %p2373_p11 }
 0x672   : > { %p2371_p10 = pneg %p2370_p4 }
 0x673   : > { %p2377_p9 = por %p2376_p5, %p2375_p6 }
 0x675   : > { %p2378_p12 = pnand %p2377_p9, %p2371_p10 }
 0x677   : > { %2381 = shalt.err (!%p2378_p12)
}
 0x678   : > { %2102 = dma.vmem_to_hbm [thread:$0]  (%p3120_p7), %s3043_s20, 128, %s3041_s28, %s1498_s26  }
 0x679 PF: > { %s1523_s18 = sand.u32 1, %s2416_s13   ;;  %p3121_p3 = scmp.ne.s32.totalorder %s3111_s12, 0 }
 0x67a   : > { %p3122_p13 = scmp.ge.s32.totalorder %s2428_s16, 2  ;;  %s1524_s25 = scalar_lea.sflag [#allocation4], %s1523_s18 }
 0x67c   : > { %p2122_p0 = pnand %p3122_p13, %p3121_p3 }
 0x67e   : > { %2411 = dma.done.wait (!%p2122_p0), %s1524_s25, 128  }
 0x67f   : > { %2413 = vsyncadd (!%p2122_p0), %s1524_s25, 4294967168  ;;  %p25_p2 = scmp.ge.s32.totalorder %s2650_s11, 4   ;;  %s3123_s13 = smov %s2420_s14 }
 0x680   : > { %s3124_s14 = smov %s2424_s15  ;;  %s3125_s15 = smov %s2661_s29 }
 0x681   : > { %s3126_s16 = smov %s2650_s11  ;;  %27 = sbr.rel (!%p25_p2) target bundleno = 11 (0xb), region = 124 }
 0x688   :  { %1529 = vsyncpa [#allocation3], 1 }
 0x689   :  { %1531 = vsyncpa [#allocation3 + $0x1], 1 }
 0x68a   :  { %1532 = vsyncpa [#allocation6], 1 }
 0x68b   :  { %1533 = vsyncpa [#allocation9], 1 }
 0x68c   :  { %1534 = vsyncpa [#allocation4], 1 }
 0x68d   :  { %1536 = vsyncpa [#allocation4 + $0x1], 1 }

</bundles_post_ra>
